<compile_context>
chip_gen: v7x
topology: tpu7x:2x2x1
jax: 0.10.0
libtpu: 0.0.40
codegen_flags: <defaults>
</compile_context>

<pallas_src>
import functools

import jax
import jax.numpy as jnp
from jax.experimental import pallas as pl
from jax.experimental.pallas import tpu as pltpu

GAMMA = 2.0       # focal exponent of the _FocalLoss module instance
LANE = 128        # TPU lane width
CHUNK_ROWS = 512  # rows per in-kernel compute sub-chunk (bounds VMEM temporaries)


def _round_up(v, m):
    return ((v + m - 1) // m) * m


def _focal_loss_kernel(x_ref, t_ref, part_ref, *, gamma, chunk, valid_rows):
    """One grid step: partial focal-BCE sum of a (tr, 128) row block -> (8, 128)."""
    block_rows = x_ref.shape[0]
    num_chunks = block_rows // chunk
    row0 = pl.program_id(0) * block_rows          # first global row of this block

    def body(c, acc):
        off = pl.multiple_of(c * chunk, chunk)
        x = x_ref[pl.ds(off, chunk), :].astype(jnp.float32)   # probabilities
        t = t_ref[pl.ds(off, chunk), :].astype(jnp.float32)   # targets

        if valid_rows is not None:
            # Ragged tail: rows at/after `valid_rows` were never DMA'd (partial last
            # grid block) and hold garbage.  Sanitize to (x=1, t=1) BEFORE the logs
            # so they contribute exactly zero (bce == 0 and (1-x)^gamma == 0).
            ridx = row0 + off + jax.lax.broadcasted_iota(jnp.int32, (chunk, LANE), 0)
            ok = ridx < valid_rows
            x = jnp.where(ok, x, 1.0)
            t = jnp.where(ok, t, 1.0)

        # BCELoss(reduction='none'); PyTorch clamps the log terms at -100.
        log_x = jnp.maximum(jnp.log(x), -100.0)
        log_1mx = jnp.maximum(jnp.log(1.0 - x), -100.0)
        bce = -(t * log_x + (1.0 - t) * log_1mx)

        # Focal modulation: (t==1) -> (1-x)^gamma, (t==0) -> x^gamma, else unmodified.
        one_minus_x = 1.0 - x
        if gamma == 2.0:                  # static specialization: no pow
            pos_mod = one_minus_x * one_minus_x
            neg_mod = x * x
        elif gamma == 1.0:
            pos_mod = one_minus_x
            neg_mod = x
        else:
            pos_mod = jnp.power(one_minus_x, gamma)
            neg_mod = jnp.power(x, gamma)
        focal = bce * jnp.where(t == 1.0, pos_mod, jnp.where(t == 0.0, neg_mod, 1.0))

        # Lane-parallel partial sum: fold rows mod 8 -> one (8,128) vreg added to acc.
        return acc + jnp.sum(focal.reshape(chunk // 8, 8, LANE), axis=0)

    acc0 = jnp.zeros((8, LANE), jnp.float32)
    part_ref[...] = jax.lax.fori_loop(0, num_chunks, body, acc0, unroll=True)


def focal_loss(outputs, targets, gamma=GAMMA, reduction="mean", tile_rows=4096):
    """_FocalLoss(BCELoss(reduction='none'), gamma).forward(outputs, targets)."""
    assert outputs.shape == targets.shape
    if reduction == "none":
        # TODO(synk): elementwise ('none') output path not implemented; module default is 'mean'.
        raise NotImplementedError("only 'mean' and 'sum' reductions are implemented")

    n = int(outputs.size)
    rows = -(-n // LANE)                      # rows holding at least one valid element

    # Minimum row multiple so a (tr, 128) block respects the dtype's minimum tile
    # ((8,128) f32, (16,128) bf16/f16, (32,128) int8/fp8).
    itemsize = jnp.dtype(outputs.dtype).itemsize
    row_align = max(8, 32 // max(1, int(itemsize)))

    tr = _round_up(min(int(tile_rows), _round_up(rows, row_align)), row_align)
    chunk = min(CHUNK_ROWS, tr)
    if tr % chunk:
        tr = _round_up(tr, chunk)             # block rows must be a chunk multiple

    rows_arr = max(rows, tr)                  # rows of the 2-D slab handed to Pallas
    num_blocks = -(-rows_arr // tr)
    needs_mask = (rows_arr % tr) != 0         # partial last block -> in-kernel tail mask

    # No-copy fast path: lane-aligned inputs are only *reshaped* (no jnp.pad, which
    # would read + rewrite both full arrays in HBM before the kernel streams them).
    # Lane-unaligned / tiny inputs pad the flat tail with (x=1, t=1): zero loss.
    # TODO(synk): a fully pad-free path for n % 128 != 0 would need 1-D streaming or
    # manual DMA; not worth it since that tail pad is the rare, small case.
    pad = rows_arr * LANE - n
    if pad == 0:
        x2d = outputs.reshape(rows_arr, LANE)
        t2d = targets.reshape(rows_arr, LANE)
    else:
        x2d = jnp.pad(outputs.reshape(-1), (0, pad), constant_values=1.0).reshape(rows_arr, LANE)
        t2d = jnp.pad(targets.reshape(-1), (0, pad), constant_values=1.0).reshape(rows_arr, LANE)

    # `n` (hence `rows`) is trace-time static, so the tail bound is baked in as a
    # compile-time constant; no scalar prefetch needed.
    kernel = functools.partial(
        _focal_loss_kernel,
        gamma=float(gamma),
        chunk=chunk,
        valid_rows=rows if needs_mask else None,
    )

    partials = pl.pallas_call(
        kernel,
        out_shape=jax.ShapeDtypeStruct((num_blocks * 8, LANE), jnp.float32),
        grid_spec=pltpu.PrefetchScalarGridSpec(
            num_scalar_prefetch=0,
            grid=(num_blocks,),
            in_specs=[
                pl.BlockSpec((tr, LANE), lambda i: (i, 0)),
                pl.BlockSpec((tr, LANE), lambda i: (i, 0)),
            ],
            out_specs=pl.BlockSpec((8, LANE), lambda i: (i, 0)),
        ),
        compiler_params=pltpu.CompilerParams(
            # Independent per-block partials -> fully parallel grid.
            # TODO(synk): on v7x, verify in xprof that both TensorCores run the grid;
            # if not, shard row blocks explicitly (pltpu.CORE_PARALLEL / pl.core_map).
            dimension_semantics=("parallel",),
        ),
    )(x2d, t2d)

    total = jnp.sum(partials)                 # tiny final reduction in plain JAX
    if reduction == "sum":
        return total
    return total / n                          # 'mean' over the TRUE element count


def focal_loss_ref(outputs, targets, gamma=GAMMA):
    """Pure-JAX reference matching the PyTorch _FocalLoss(BCELoss, gamma, 'mean')."""
    x = outputs.astype(jnp.float32)
    t = targets.astype(jnp.float32)
    log_x = jnp.maximum(jnp.log(x), -100.0)
    log_1mx = jnp.maximum(jnp.log(1.0 - x), -100.0)
    bce = -(t * log_x + (1.0 - t) * log_1mx)
    mod = jnp.where(t == 1.0, (1.0 - x) ** gamma, jnp.where(t == 0.0, x ** gamma, 1.0))
    return jnp.mean(bce * mod)


if __name__ == "__main__":
    key = jax.random.PRNGKey(0)
    k1, k2, k3, k4, k5, k6 = jax.random.split(key, 6)

    # 1) NCHW f32 inputs: batch=2, channels=4, spatial=16x16 (lane-aligned -> no pad).
    #    Targets mix exact 0s, exact 1s and a soft value so every focal branch runs.
    B, C, H, W = 2, 4, 16, 16
    outputs = jax.nn.sigmoid(jax.random.normal(k1, (B, C, H, W), dtype=jnp.float32))
    u = jax.random.uniform(k2, (B, C, H, W), dtype=jnp.float32)
    targets = jnp.where(u < 0.4, 0.0, jnp.where(u < 0.8, 1.0, 0.5))
    loss = jax.block_until_ready(focal_loss(outputs, targets))
    ref = jax.block_until_ready(focal_loss_ref(outputs, targets))
    assert jnp.allclose(loss, ref, rtol=1e-5, atol=1e-6), (loss, ref)

    # 2) Lane-unaligned shape (210 elements) -> exercises the zero-contribution pad path.
    shape2 = (2, 3, 7, 5)
    outputs2 = jax.nn.sigmoid(jax.random.normal(k3, shape2, dtype=jnp.float32))
    targets2 = (jax.random.uniform(k4, shape2) > 0.5).astype(jnp.float32)
    loss2 = jax.block_until_ready(focal_loss(outputs2, targets2))
    ref2 = jax.block_until_ready(focal_loss_ref(outputs2, targets2))
    assert jnp.allclose(loss2, ref2, rtol=1e-5, atol=1e-6), (loss2, ref2)

    # 3) bf16 streaming path (no wrapper cast; kernel upcasts internally).
    outputs3 = outputs.astype(jnp.bfloat16)
    targets3 = (u < 0.5).astype(jnp.bfloat16)
    loss3 = jax.block_until_ready(focal_loss(outputs3, targets3))
    ref3 = jax.block_until_ready(focal_loss_ref(outputs3, targets3))
    assert jnp.allclose(loss3, ref3, rtol=1e-4, atol=1e-5), (loss3, ref3)

    # 4) Multi-block grid with a ragged last block -> exercises the no-pad in-kernel
    #    tail mask (1152 elements = 9 rows, tile_rows=8 -> 2 blocks, last block partial).
    shape4 = (2, 4, 12, 12)
    outputs4 = jax.nn.sigmoid(jax.random.normal(k5, shape4, dtype=jnp.float32))
    targets4 = (jax.random.uniform(k6, shape4) > 0.5).astype(jnp.float32)
    loss4 = jax.block_until_ready(focal_loss(outputs4, targets4, tile_rows=8))
    ref4 = jax.block_until_ready(focal_loss_ref(outputs4, targets4))
    assert jnp.allclose(loss4, ref4, rtol=1e-5, atol=1e-6), (loss4, ref4)

    print("KERNEL_OK")
</pallas_src>

<mosaic_0001>
module attributes {stable_mosaic.version = 11 : i64} {
  func.func @_focal_loss_kernel(%arg0: i32, %arg1: memref<16x128xf32, #tpu.memory_space<vmem>>, %arg2: memref<16x128xf32, #tpu.memory_space<vmem>>, %arg3: memref<8x128xf32, #tpu.memory_space<vmem>>) attributes {dimension_semantics = [#tpu.dimension_semantics<parallel>], iteration_bounds = array<i64: 1>, scalar_prefetch = 0 : i64, scratch_operands = 0 : i64, tpu.core_type = #tpu.core_type<tc>, window_params = [{transform_indices = @transform_0, window_bounds = array<i64: 16, 128>}, {transform_indices = @transform_1, window_bounds = array<i64: 16, 128>}, {transform_indices = @transform_2, window_bounds = array<i64: 8, 128>}]} {
    %cst = arith.constant 0.000000e+00 : f32
    %0 = vector.broadcast %cst : f32 to vector<8x128xf32>
    %c0_i32 = arith.constant 0 : i32
    %c16_i32 = arith.constant 16 : i32
    %1 = arith.muli %c0_i32, %c16_i32 : i32
    %2 = tpu.assume_multiple %1, 16 : i32
    %3 = arith.index_cast %2 : i32 to index
    %c0 = arith.constant 0 : index
    %4 = vector.load %arg1[%3, %c0] : memref<16x128xf32, #tpu.memory_space<vmem>>, vector<16x128xf32>
    %5 = arith.index_cast %2 : i32 to index
    %c0_0 = arith.constant 0 : index
    %6 = vector.load %arg2[%5, %c0_0] : memref<16x128xf32, #tpu.memory_space<vmem>>, vector<16x128xf32>
    %7 = math.log %4 : vector<16x128xf32>
    %cst_1 = arith.constant -1.000000e+02 : f32
    %8 = vector.broadcast %cst_1 : f32 to vector<16x128xf32>
    %9 = arith.maximumf %7, %8 : vector<16x128xf32>
    %cst_2 = arith.constant 1.000000e+00 : f32
    %10 = vector.broadcast %cst_2 : f32 to vector<16x128xf32>
    %11 = arith.subf %10, %4 : vector<16x128xf32>
    %12 = math.log %11 : vector<16x128xf32>
    %cst_3 = arith.constant -1.000000e+02 : f32
    %13 = vector.broadcast %cst_3 : f32 to vector<16x128xf32>
    %14 = arith.maximumf %12, %13 : vector<16x128xf32>
    %15 = arith.mulf %6, %9 : vector<16x128xf32>
    %cst_4 = arith.constant 1.000000e+00 : f32
    %16 = vector.broadcast %cst_4 : f32 to vector<16x128xf32>
    %17 = arith.subf %16, %6 : vector<16x128xf32>
    %18 = arith.mulf %17, %14 : vector<16x128xf32>
    %19 = arith.addf %15, %18 : vector<16x128xf32>
    %cst_5 = arith.constant 0.000000e+00 : f32
    %20 = vector.broadcast %cst_5 : f32 to vector<16x128xf32>
    %21 = arith.subf %20, %19 : vector<16x128xf32>
    %cst_6 = arith.constant 1.000000e+00 : f32
    %22 = vector.broadcast %cst_6 : f32 to vector<16x128xf32>
    %23 = arith.subf %22, %4 : vector<16x128xf32>
    %24 = arith.mulf %23, %23 : vector<16x128xf32>
    %25 = arith.mulf %4, %4 : vector<16x128xf32>
    %cst_7 = arith.constant 1.000000e+00 : f32
    %26 = vector.broadcast %cst_7 : f32 to vector<16x128xf32>
    %27 = arith.cmpf oeq, %6, %26 : vector<16x128xf32>
    %cst_8 = arith.constant 0.000000e+00 : f32
    %28 = vector.broadcast %cst_8 : f32 to vector<16x128xf32>
    %29 = arith.cmpf oeq, %6, %28 : vector<16x128xf32>
    %cst_9 = arith.constant 1.000000e+00 : f32
    %30 = vector.broadcast %cst_9 : f32 to vector<16x128xf32>
    %31 = arith.select %29, %25, %30 : vector<16x128xi1>, vector<16x128xf32>
    %32 = arith.select %27, %24, %31 : vector<16x128xi1>, vector<16x128xf32>
    %33 = arith.mulf %21, %32 : vector<16x128xf32>
    %34 = vector.shape_cast %33 : vector<16x128xf32> to vector<2x8x128xf32>
    %cst_10 = arith.constant dense<0.000000e+00> : vector<8x128xf32>
    %35 = vector.multi_reduction <add>, %34, %cst_10 [0] : vector<2x8x128xf32> to vector<8x128xf32>
    %36 = arith.addf %0, %35 : vector<8x128xf32>
    %c1_i32 = arith.constant 1 : i32
    %c0_11 = arith.constant 0 : index
    %c0_12 = arith.constant 0 : index
    %37 = vector.load %arg3[%c0_11, %c0_12] : memref<8x128xf32, #tpu.memory_space<vmem>>, vector<8x128xf32>
    tpu.vector_store %arg3[%c0_11, %c0_12], %36 {strides = array<i32>} : memref<8x128xf32, #tpu.memory_space<vmem>>, vector<8x128xf32>,
    return
  }
  func.func @transform_0(%arg0: i32) -> (i32, i32) {
    %c0_i32 = arith.constant 0 : i32
    %c0_i32_0 = arith.constant 0 : i32
    return %arg0, %c0_i32 : i32, i32
  }
  func.func @transform_1(%arg0: i32) -> (i32, i32) {
    %c0_i32 = arith.constant 0 : i32
    %c0_i32_0 = arith.constant 0 : i32
    return %arg0, %c0_i32 : i32, i32
  }
  func.func @transform_2(%arg0: i32) -> (i32, i32) {
    %c0_i32 = arith.constant 0 : i32
    %c0_i32_0 = arith.constant 0 : i32
    return %arg0, %c0_i32 : i32, i32
  }
}

</mosaic_0001>

<bundles_post_ra>
// kernel: tpu_custom_call.1
= control target key start
LH: loop header
LB: loop body
LE: loop exit
PB: predicated region body
PF: predicated region fallthrough
CT: control target
= control target key end

     0   :  { %7 = vsyncpa [#allocation3], 0  ;;  %s242_s0 = inlined_call_operand.hbm [shape: f32[16,128], index: 0, kind: input, shape index: {}]   ;;  %s243_s1 = inlined_call_operand.hbm [shape: f32[16,128], index: 1, kind: input, shape index: {}]   ;;  %s244_s2 = inlined_call_operand.hbm [shape: f32[8,128], index: 2, kind: output, shape index: {}]  }
   0x1   :  { %8 = vsyncpa [#allocation6], 0 }
   0x2   :  { %9 = vsyncpa [#allocation4], 0  ;;  %s186_s9 = smov [#allocation2]   ;;  %s114_s13 = scalar_lea.hbm %s242_s0, 256 }
   0x3   :  { %s15_s10 = sshll.u32 %s186_s9, 4  ;;  %p115_p0 = scmp.ne.s32.totalorder %s242_s0, %s114_s13  ;;  %s16_s10 = int_to_ptr.vmem [resolvable:$true] %s15_s10 }
   0x4   :  { %p118_p1 = scmp.lt.u32.totalorder %s114_s13, %s242_s0 }
   0x6   :  { %p120_p2 = pnand %p118_p1, %p115_p0 }
   0x8   :  { %123 = shalt.err (!%p120_p2)
}
   0x9   :  { %s124_s18 = scalar_lea.vmem %s16_s10, 256  ;;  %p129_p4 = scmp.lt.s32.totalorder %s16_s10, %s16_s10 }
   0xa   :  { %p125_p3 = scmp.ne.s32.totalorder %s16_s10, %s124_s18  ;;  %p130_p5 = scmp.lt.s32.totalorder %s124_s18, %s124_s18 }
   0xc   :  { %p131_p6 = por %p130_p5, %p129_p4 }
   0xe   :  { %p132_p7 = pnand %p131_p6, %p125_p3 }
  0x10   :  { %135 = shalt.err (!%p132_p7)
}
  0x11   :  { %s187_s19 = smov 128   ;;  %s188_s20 = smov 8  }
  0x12   :  { %21 = dma.hbm_to_vmem [thread:$0]  %s242_s0, 256, %s16_s10, [#allocation3], %s187_s19, %s187_s19, %s188_s20  }
  0x13   :  { %s189_s23 = smov [#allocation5]   ;;  %s136_s27 = scalar_lea.hbm %s243_s1, 256 }
  0x14   :  { %s27_s24 = sshll.u32 %s189_s23, 4  ;;  %p137_p8 = scmp.ne.s32.totalorder %s243_s1, %s136_s27  ;;  %s28_s24 = int_to_ptr.vmem [resolvable:$true] %s27_s24 }
  0x15   :  { %p140_p9 = scmp.lt.u32.totalorder %s136_s27, %s243_s1 }
  0x17   :  { %p142_p10 = pnand %p140_p9, %p137_p8 }
  0x19   :  { %145 = shalt.err (!%p142_p10)
}
  0x1a   :  { %s146_s4 = scalar_lea.vmem %s28_s24, 256  ;;  %p151_p12 = scmp.lt.s32.totalorder %s28_s24, %s28_s24 }
  0x1b   :  { %p147_p11 = scmp.ne.s32.totalorder %s28_s24, %s146_s4  ;;  %p152_p13 = scmp.lt.s32.totalorder %s146_s4, %s146_s4 }
  0x1d   :  { %p153_p0 = por %p152_p13, %p151_p12 }
  0x1f   :  { %p154_p1 = pnand %p153_p0, %p147_p11 }
  0x21   :  { %157 = shalt.err (!%p154_p1)
}
  0x22   :  { %33 = dma.hbm_to_vmem [thread:$0]  %s243_s1, 256, %s28_s24, [#allocation6], %s187_s19, %s187_s19, %s188_s20  }
  0x23   :  { %180 = dma.done.wait [#allocation3], 256  }
  0x24   :  { %181 = vsyncadd [#allocation3], 4294967040 }
  0x25   :  { %182 = dma.done.wait [#allocation6], 256  }
  0x26   :  { %183 = vsyncadd [#allocation6], 4294967040  ;;  %v40_v0 = vld [vmem:[#allocation2] sm:$0xff]  ;;  %v41_v1 = vld [vmem:[#allocation2 + $0x8] sm:$0xff]  ;;  %s190_s1 = smov [#allocation7]  }
  0x27   :  { %106 = vlog2.f32 %v40_v0  ;;  %v50_v2 = vsub.f32 1.0, %v40_v0  ;;  %v51_v3 = vsub.f32 1.0, %v41_v1  ;;  %v42_v4 = vld [vmem:[#allocation5] sm:$0xff]  ;;  %v43_v6 = vld [vmem:[#allocation5 + $0x8] sm:$0xff]  ;;  %v70_v16 = vmul.f32 %v40_v0, %v40_v0  ;;  %s91_s6 = sshll.u32 %s190_s1, 4  ;;  %s92_s6 = int_to_ptr.vmem [resolvable:$true] %s91_s6 }
  0x28   :  { %108 = vlog2.f32 %v41_v1  ;;  %v60_v11 = vsub.f32 1.0, %v42_v4  ;;  %v61_v15 = vsub.f32 1.0, %v43_v6  ;;  %v71_v19 = vmul.f32 %v41_v1, %v41_v1  ;;  %s158_s7 = scalar_lea.vmem %s92_s6, 128  ;;  %p163_p3 = scmp.lt.s32.totalorder %s92_s6, %s92_s6 }
  0x29   :  { %110 = vlog2.f32 %v50_v2  ;;  %vm74_vm0 = vcmp.eq.f32.partialorder %v42_v4, 0.0  ;;  %vm75_vm1 = vcmp.eq.f32.partialorder %v43_v6, 0.0  ;;  %v68_v24 = vmul.f32 %v50_v2, %v50_v2  ;;  %p159_p2 = scmp.ne.s32.totalorder %s92_s6, %s158_s7  ;;  %p164_p4 = scmp.lt.s32.totalorder %s158_s7, %s158_s7 }
  0x2a   :  { %112 = vlog2.f32 %v51_v3  ;;  %v69_v26 = vmul.f32 %v51_v3, %v51_v3  ;;  %vm72_vm2 = vcmp.eq.f32.partialorder %v42_v4, 1.0  ;;  %v76_v27 = vsel %vm74_vm0, %v70_v16, 1.0 }
  0x2b   :  { %vm73_vm3 = vcmp.eq.f32.partialorder %v43_v6, 1.0  ;;  %v77_v29 = vsel %vm75_vm1, %v71_v19, 1.0  ;;  %v78_v32 = vsel %vm72_vm2, %v68_v24, %v76_v27  ;;  %p165_p5 = por %p164_p4, %p163_p3 }
  0x2c   :  { %v79_v34 = vsel %vm73_vm3, %v69_v26, %v77_v29 }
  0x2d   :  { %p166_p6 = pnand %p165_p5, %p159_p2 }
  0x31   :  { %v107_v5 = vpop.eup %106 }
  0x32   :  { %v109_v7 = vpop.eup %108  ;;  %v45_v8 = vmul.f32 0.6931472, %v107_v5 }
  0x33   :  { %v111_v9 = vpop.eup %110  ;;  %v47_v10 = vmul.f32 0.6931472, %v109_v7 }
  0x34   :  { %v113_v12 = vpop.eup %112  ;;  %v48_v13 = vmax.f32 %v45_v8, -100.0  ;;  %v53_v14 = vmul.f32 0.6931472, %v111_v9 }
  0x35   :  { %v49_v17 = vmax.f32 %v47_v10, -100.0  ;;  %v55_v18 = vmul.f32 0.6931472, %v113_v12 }
  0x36   :  { %v56_v20 = vmax.f32 %v53_v14, -100.0  ;;  %v58_v21 = vmul.f32 %v48_v13, %v42_v4 }
  0x37   :  { %v57_v22 = vmax.f32 %v55_v18, -100.0  ;;  %v59_v23 = vmul.f32 %v49_v17, %v43_v6 }
  0x38   :  { %v62_v25 = vmul.f32 %v60_v11, %v56_v20 }
  0x39   :  { %v63_v28 = vmul.f32 %v61_v15, %v57_v22 }
  0x3a   :  { %v64_v30 = vadd.f32 %v62_v25, %v58_v21 }
  0x3b   :  { %v65_v31 = vadd.f32 %v63_v28, %v59_v23 }
  0x3c   :  { %v66_v33 = vsub.f32 0.0, %v64_v30 }
  0x3d   :  { %v67_v35 = vsub.f32 0.0, %v65_v31 }
  0x3e   :  { %v80_v36 = vmul.f32 %v78_v32, %v66_v33 }
  0x3f   :  { %v81_v37 = vmul.f32 %v79_v34, %v67_v35 }
  0x41   :  { %v82_v38 = vadd.f32 %v81_v37, %v80_v36 }
  0x43   :  { %84 = vst [vmem:[#allocation7] sm:$0xff] %v82_v38 }
  0x44   :  { %169 = shalt.err (!%p166_p6)
}
  0x45   :  { %s170_s10 = scalar_lea.hbm %s244_s2, 128 }
  0x46   :  { %p171_p7 = scmp.ne.s32.totalorder %s244_s2, %s170_s10  ;;  %p174_p8 = scmp.lt.u32.totalorder %s170_s10, %s244_s2 }
  0x48   :  { %p176_p9 = pnand %p174_p8, %p171_p7 }
  0x4a   :  { %179 = shalt.err (!%p176_p9)
}
  0x4b   :  { %94 = dma.vmem_to_hbm [thread:$0]  %s92_s6, 128, %s244_s2, [#allocation4]  }
  0x4c   :  { %184 = dma.done.wait [#allocation4], 128  }
  0x4d   :  { %185 = vsyncadd [#allocation4], 4294967168 }
  0x4e   :  { %98 = vsyncpa [#allocation3], 1 }
  0x4f   :  { %99 = vsyncpa [#allocation6], 1 }
  0x50   :  { %100 = vsyncpa [#allocation4], 1 }

</bundles_post_ra>
